<compile_context>
chip_gen: v6e
topology: v6e:2x2x1
jax: 0.10.0
libtpu: 0.0.40
codegen_flags: <defaults>
</compile_context>

<pallas_src>
import functools

import jax
import jax.numpy as jnp
from jax.experimental import pallas as pl
from jax.experimental.pallas import tpu as pltpu


def channel_attention_kernel(x_ref, w1t_ref, b1_ref, w2t_ref, b2_ref,
                             o_ref, sum_ref, max_ref, *, inv_hw, bn):
    # x_ref  : (bn, C, hw_tile)  native dtype tile of the flattened input
    # w1t_ref: (C, Cr)  f32      first 1x1 conv weight, pre-transposed
    # b1_ref : (1, Cr)  f32
    # w2t_ref: (Cr, C)  f32      second 1x1 conv weight, pre-transposed
    # b2_ref : (1, C)   f32
    # o_ref  : (bn, 1, C)        attention weights for these batch rows
    # sum_ref/max_ref: (bn, C) f32 accumulators (persist across the k axis)
    k = pl.program_id(1)

    @pl.when(k == 0)
    def _init():
        sum_ref[...] = jnp.zeros_like(sum_ref)
        max_ref[...] = jnp.full_like(max_ref, -jnp.inf)

    # Single tile load; both reductions (lane-axis reduce) reuse the same vregs.
    xb = x_ref[...].astype(jnp.float32)                 # (bn, C, hw_tile)
    sum_ref[...] += jnp.sum(xb, axis=-1)                # (bn, C)
    max_ref[...] = jnp.maximum(max_ref[...], jnp.max(xb, axis=-1))

    @pl.when(k == pl.num_programs(1) - 1)
    def _finalize():
        avg = sum_ref[...] * inv_hw                              # (bn, C)
        pooled = jnp.concatenate([avg, max_ref[...]], axis=0)    # (2*bn, C)

        # Fused shared MLP for all pooled rows (one pair of MXU passes).
        h = jnp.dot(pooled, w1t_ref[...],
                    preferred_element_type=jnp.float32) + b1_ref[...]   # (2*bn, Cr)
        h = jnp.maximum(h, 0.0)                                          # ReLU
        logits2 = jnp.dot(h, w2t_ref[...],
                          preferred_element_type=jnp.float32) + b2_ref[...]  # (2*bn, C)

        logits = logits2[0:bn, :] + logits2[bn:2 * bn, :]        # (bn, C)
        o_ref[...] = jax.nn.sigmoid(logits)[:, None, :].astype(o_ref.dtype)


def _pick_hw_tile(hw, c, dtype_bytes, target_bytes=2 * 1024 * 1024):
    """Largest multiple of 128 that divides hw with C*tile*bytes <= target."""
    if hw % 128 != 0:
        # Must take the full spatial extent as one block (last-dim rule).
        return hw
    max_lanes = max(128, target_bytes // max(1, c * dtype_bytes))
    tile = 128
    upper = min(hw, (max_lanes // 128) * 128)
    for t in range(128, upper + 1, 128):
        if hw % t == 0:
            tile = t
    return tile


def _pick_bn(n, c, hw_tile, dtype_bytes, target_bytes=2 * 1024 * 1024):
    """Largest divisor of N keeping bn*C*hw_tile*bytes <= target (>= 1)."""
    per_row = c * hw_tile * dtype_bytes
    best = 1
    for bn in range(1, n + 1):
        if n % bn == 0 and bn * per_row <= target_bytes:
            best = bn
    return best


def channel_attention(x, w1, b1, w2, b2):
    """x: (N, C, H, W); w1: (Cr, C); b1: (Cr,); w2: (C, Cr); b2: (C,).

    Returns (N, C, 1, 1), matching sigmoid(mlp(avg_pool(x)) + mlp(max_pool(x))).
    """
    N, C, H, W = x.shape
    HW = H * W
    Cr = w1.shape[0]
    dtype_bytes = jnp.dtype(x.dtype).itemsize

    # Free contiguous reshape: put the flattened spatial axis on the lanes.
    # Keep the input in its native dtype (no wrapper upcast => no extra HBM traffic).
    x3 = x.reshape(N, C, HW)

    # Pre-transpose the tiny weights so the kernel does plain row-major matmuls.
    w1t = jnp.asarray(w1, jnp.float32).T.reshape(C, Cr)   # (C, Cr)
    w2t = jnp.asarray(w2, jnp.float32).T.reshape(Cr, C)   # (Cr, C)
    b1_2d = jnp.asarray(b1, jnp.float32).reshape(1, Cr)
    b2_2d = jnp.asarray(b2, jnp.float32).reshape(1, C)

    hw_tile = _pick_hw_tile(HW, C, dtype_bytes)
    n_k = HW // hw_tile
    bn = _pick_bn(N, C, hw_tile, dtype_bytes)
    n_b = N // bn

    cost = pl.CostEstimate(
        flops=2 * N * C * HW + 8 * N * C * Cr,
        transcendentals=N * C,
        bytes_accessed=N * C * HW * dtype_bytes
        + (2 * C * Cr + Cr + C) * 4
        + N * C * dtype_bytes,
    )

    kernel = functools.partial(channel_attention_kernel,
                               inv_hw=1.0 / float(HW), bn=bn)

    out = pl.pallas_call(
        kernel,
        out_shape=jax.ShapeDtypeStruct((N, 1, C), x.dtype),
        grid_spec=pltpu.PrefetchScalarGridSpec(
            num_scalar_prefetch=0,
            grid=(n_b, n_k),
            in_specs=[
                pl.BlockSpec((bn, C, hw_tile), lambda n, k: (n, 0, k)),
                pl.BlockSpec((C, Cr), lambda n, k: (0, 0)),
                pl.BlockSpec((1, Cr), lambda n, k: (0, 0)),
                pl.BlockSpec((Cr, C), lambda n, k: (0, 0)),
                pl.BlockSpec((1, C), lambda n, k: (0, 0)),
            ],
            out_specs=pl.BlockSpec((bn, 1, C), lambda n, k: (n, 0, 0)),
            scratch_shapes=[
                pltpu.VMEM((bn, C), jnp.float32),   # running sum
                pltpu.VMEM((bn, C), jnp.float32),   # running max
            ],
        ),
        compiler_params=pltpu.CompilerParams(
            dimension_semantics=("parallel", "arbitrary"),
            vmem_limit_bytes=32 * 1024 * 1024,
        ),
        cost_estimate=cost,
    )(x3, w1t, b1_2d, w2t, b2_2d)

    return out.reshape(N, C, 1, 1)


def reference_channel_attention(x, w1, b1, w2, b2):
    """Pure-JAX reference matching the PyTorch forward."""
    xf = jnp.asarray(x, jnp.float32)
    avg = jnp.mean(xf, axis=(-2, -1))  # (N, C)
    mx = jnp.max(xf, axis=(-2, -1))    # (N, C)

    def mlp(v):
        h = jnp.maximum(v @ w1.T + b1, 0.0)
        return h @ w2.T + b2

    return jax.nn.sigmoid(mlp(avg) + mlp(mx)).reshape(*x.shape[:2], 1, 1)


if __name__ == "__main__":
    key = jax.random.PRNGKey(0)
    k_x, k_w1, k_b1, k_w2, k_b2 = jax.random.split(key, 5)

    # Shapes consistent with the module: in_planes=16, ratio=8 -> hidden=2.
    N, C, H, W = 2, 16, 16, 16
    ratio = 8
    Cr = C // ratio

    x = jax.random.normal(k_x, (N, C, H, W), dtype=jnp.float32)

    # Synthetic parameters (shapes from nn.Conv2d(C, Cr, 1) / nn.Conv2d(Cr, C, 1)).
    w1 = 0.1 * jax.random.normal(k_w1, (Cr, C), dtype=jnp.float32)
    b1 = 0.1 * jax.random.normal(k_b1, (Cr,), dtype=jnp.float32)
    w2 = 0.1 * jax.random.normal(k_w2, (C, Cr), dtype=jnp.float32)
    b2 = 0.1 * jax.random.normal(k_b2, (C,), dtype=jnp.float32)

    out = channel_attention(x, w1, b1, w2, b2)
    out = jax.block_until_ready(out)

    ref = reference_channel_attention(x, w1, b1, w2, b2)
    assert out.shape == (N, C, 1, 1), out.shape
    assert jnp.allclose(out, ref, atol=1e-5, rtol=1e-5), float(jnp.max(jnp.abs(out - ref)))

    print("KERNEL_OK")
</pallas_src>

<mosaic_0001>
module attributes {stable_mosaic.version = 11 : i64} {
  func.func @channel_attention_kernel(%arg0: i32, %arg1: i32, %arg2: memref<2x16x256xf32, #tpu.memory_space<vmem>>, %arg3: memref<16x2xf32, #tpu.memory_space<vmem>>, %arg4: memref<1x2xf32, #tpu.memory_space<vmem>>, %arg5: memref<2x16xf32, #tpu.memory_space<vmem>>, %arg6: memref<1x16xf32, #tpu.memory_space<vmem>>, %arg7: memref<2x1x16xf32, #tpu.memory_space<vmem>>, %arg8: memref<2x16xf32, #tpu.memory_space<vmem>>, %arg9: memref<2x16xf32, #tpu.memory_space<vmem>>) attributes {dimension_semantics = [#tpu.dimension_semantics<parallel>, #tpu.dimension_semantics<arbitrary>], iteration_bounds = array<i64: 1, 1>, scalar_prefetch = 0 : i64, scratch_operands = 2 : i64, tpu.core_type = #tpu.core_type<tc>, window_params = [{transform_indices = @transform_0, window_bounds = array<i64: 2, 16, 256>}, {pipeline_mode = #tpu.pipeline_mode<synchronous>, transform_indices = @transform_1, window_bounds = array<i64: 16, 2>}, {pipeline_mode = #tpu.pipeline_mode<synchronous>, transform_indices = @transform_2, window_bounds = array<i64: 1, 2>}, {pipeline_mode = #tpu.pipeline_mode<synchronous>, transform_indices = @transform_3, window_bounds = array<i64: 2, 16>}, {pipeline_mode = #tpu.pipeline_mode<synchronous>, transform_indices = @transform_4, window_bounds = array<i64: 1, 16>}, {transform_indices = @transform_5, window_bounds = array<i64: 2, 1, 16>}]} {
    %c0_i32 = arith.constant 0 : i32
    %0 = arith.cmpi eq, %arg1, %c0_i32 : i32
    %1 = arith.extui %0 : i1 to i32
    %c0_i32_0 = arith.constant 0 : i32
    %2 = arith.cmpi ne, %1, %c0_i32_0 : i32
    scf.if %2 {
      %cst_14 = arith.constant 0.000000e+00 : f32
      %15 = vector.broadcast %cst_14 : f32 to vector<2x16xf32>
      %c0_15 = arith.constant 0 : index
      %c0_16 = arith.constant 0 : index
      %16 = vector.load %arg8[%c0_15, %c0_16] : memref<2x16xf32, #tpu.memory_space<vmem>>, vector<2x16xf32>
      tpu.vector_store %arg8[%c0_15, %c0_16], %15 {strides = array<i32>} : memref<2x16xf32, #tpu.memory_space<vmem>>, vector<2x16xf32>,
      %cst_17 = arith.constant 0xFF800000 : f32
      %17 = vector.broadcast %cst_17 : f32 to vector<2x16xf32>
      %c0_18 = arith.constant 0 : index
      %c0_19 = arith.constant 0 : index
      %18 = vector.load %arg9[%c0_18, %c0_19] : memref<2x16xf32, #tpu.memory_space<vmem>>, vector<2x16xf32>
      tpu.vector_store %arg9[%c0_18, %c0_19], %17 {strides = array<i32>} : memref<2x16xf32, #tpu.memory_space<vmem>>, vector<2x16xf32>,
    } else {
    }
    %c0 = arith.constant 0 : index
    %c0_1 = arith.constant 0 : index
    %c0_2 = arith.constant 0 : index
    %3 = vector.load %arg2[%c0, %c0_1, %c0_2] : memref<2x16x256xf32, #tpu.memory_space<vmem>>, vector<2x16x256xf32>
    %c0_3 = arith.constant 0 : index
    %c0_4 = arith.constant 0 : index
    %4 = vector.load %arg8[%c0_3, %c0_4] : memref<2x16xf32, #tpu.memory_space<vmem>>, vector<2x16xf32>
    %cst = arith.constant dense<0.000000e+00> : vector<2x16xf32>
    %5 = vector.multi_reduction <add>, %3, %cst [2] : vector<2x16x256xf32> to vector<2x16xf32>
    %6 = arith.addf %4, %5 : vector<2x16xf32>
    %c0_5 = arith.constant 0 : index
    %c0_6 = arith.constant 0 : index
    %7 = vector.load %arg8[%c0_5, %c0_6] : memref<2x16xf32, #tpu.memory_space<vmem>>, vector<2x16xf32>
    tpu.vector_store %arg8[%c0_5, %c0_6], %6 {strides = array<i32>} : memref<2x16xf32, #tpu.memory_space<vmem>>, vector<2x16xf32>,
    %c0_7 = arith.constant 0 : index
    %c0_8 = arith.constant 0 : index
    %8 = vector.load %arg9[%c0_7, %c0_8] : memref<2x16xf32, #tpu.memory_space<vmem>>, vector<2x16xf32>
    %cst_9 = arith.constant dense<0xFF800000> : vector<2x16xf32>
    %9 = vector.multi_reduction <maximumf>, %3, %cst_9 [2] : vector<2x16x256xf32> to vector<2x16xf32>
    %10 = arith.maximumf %8, %9 : vector<2x16xf32>
    %c0_10 = arith.constant 0 : index
    %c0_11 = arith.constant 0 : index
    %11 = vector.load %arg9[%c0_10, %c0_11] : memref<2x16xf32, #tpu.memory_space<vmem>>, vector<2x16xf32>
    tpu.vector_store %arg9[%c0_10, %c0_11], %10 {strides = array<i32>} : memref<2x16xf32, #tpu.memory_space<vmem>>, vector<2x16xf32>,
    %c0_i32_12 = arith.constant 0 : i32
    %12 = arith.cmpi eq, %arg1, %c0_i32_12 : i32
    %13 = arith.extui %12 : i1 to i32
    %c0_i32_13 = arith.constant 0 : i32
    %14 = arith.cmpi ne, %13, %c0_i32_13 : i32
    scf.if %14 {
      %c0_14 = arith.constant 0 : index
      %c0_15 = arith.constant 0 : index
      %15 = vector.load %arg8[%c0_14, %c0_15] : memref<2x16xf32, #tpu.memory_space<vmem>>, vector<2x16xf32>
      %cst_16 = arith.constant 3.906250e-03 : f32
      %16 = vector.broadcast %cst_16 : f32 to vector<2x16xf32>
      %17 = arith.mulf %15, %16 : vector<2x16xf32>
      %c0_17 = arith.constant 0 : index
      %c0_18 = arith.constant 0 : index
      %18 = vector.load %arg9[%c0_17, %c0_18] : memref<2x16xf32, #tpu.memory_space<vmem>>, vector<2x16xf32>
      %19 = tpu.concatenate %17, %18 in 0 : vector<2x16xf32>, vector<2x16xf32> -> vector<4x16xf32>
      %c0_19 = arith.constant 0 : index
      %c0_20 = arith.constant 0 : index
      %20 = vector.load %arg3[%c0_19, %c0_20] : memref<16x2xf32, #tpu.memory_space<vmem>>, vector<16x2xf32>
      %cst_21 = arith.constant dense<0.000000e+00> : vector<4x2xf32>
      %21 = tpu.matmul %19, %20, %cst_21 {dimension_numbers = #tpu.dot_dimension_numbers<[1], [0], [0], [1], [0, 0, 1, 1], [], []>} : vector<4x16xf32>, vector<16x2xf32>, vector<4x2xf32> -> vector<4x2xf32>
      %c0_22 = arith.constant 0 : index
      %c0_23 = arith.constant 0 : index
      %22 = vector.load %arg4[%c0_22, %c0_23] : memref<1x2xf32, #tpu.memory_space<vmem>>, vector<1x2xf32>
      %23 = vector.broadcast %22 : vector<1x2xf32> to vector<4x2xf32>
      %24 = arith.addf %21, %23 : vector<4x2xf32>
      %cst_24 = arith.constant 0.000000e+00 : f32
      %25 = vector.broadcast %cst_24 : f32 to vector<4x2xf32>
      %26 = arith.maximumf %24, %25 : vector<4x2xf32>
      %c0_25 = arith.constant 0 : index
      %c0_26 = arith.constant 0 : index
      %27 = vector.load %arg5[%c0_25, %c0_26] : memref<2x16xf32, #tpu.memory_space<vmem>>, vector<2x16xf32>
      %cst_27 = arith.constant dense<0.000000e+00> : vector<4x16xf32>
      %28 = tpu.matmul %26, %27, %cst_27 {dimension_numbers = #tpu.dot_dimension_numbers<[1], [0], [0], [1], [0, 0, 1, 1], [], []>} : vector<4x2xf32>, vector<2x16xf32>, vector<4x16xf32> -> vector<4x16xf32>
      %c0_28 = arith.constant 0 : index
      %c0_29 = arith.constant 0 : index
      %29 = vector.load %arg6[%c0_28, %c0_29] : memref<1x16xf32, #tpu.memory_space<vmem>>, vector<1x16xf32>
      %30 = vector.broadcast %29 : vector<1x16xf32> to vector<4x16xf32>
      %31 = arith.addf %28, %30 : vector<4x16xf32>
      %32 = vector.extract_strided_slice %31 {offsets = [0, 0], sizes = [2, 16], strides = [1, 1]} : vector<4x16xf32> to vector<2x16xf32>
      %33 = vector.extract_strided_slice %31 {offsets = [2, 0], sizes = [2, 16], strides = [1, 1]} : vector<4x16xf32> to vector<2x16xf32>
      %34 = arith.addf %32, %33 : vector<2x16xf32>
      %35 = arith.negf %34 : vector<2x16xf32>
      %36 = math.exp %35 : vector<2x16xf32>
      %cst_30 = arith.constant 1.000000e+00 : f32
      %37 = vector.broadcast %cst_30 : f32 to vector<2x16xf32>
      %38 = arith.addf %37, %36 : vector<2x16xf32>
      %39 = arith.divf %37, %38 : vector<2x16xf32>
      %40 = vector.shape_cast %39 : vector<2x16xf32> to vector<2x1x16xf32>
      %c0_31 = arith.constant 0 : index
      %c0_32 = arith.constant 0 : index
      %c0_33 = arith.constant 0 : index
      %41 = vector.load %arg7[%c0_31, %c0_32, %c0_33] : memref<2x1x16xf32, #tpu.memory_space<vmem>>, vector<2x1x16xf32>
      tpu.vector_store %arg7[%c0_31, %c0_32, %c0_33], %40 {strides = array<i32>} : memref<2x1x16xf32, #tpu.memory_space<vmem>>, vector<2x1x16xf32>,
    } else {
    }
    return
  }
  func.func @transform_0(%arg0: i32, %arg1: i32) -> (i32, i32, i32) {
    %c0_i32 = arith.constant 0 : i32
    %c0_i32_0 = arith.constant 0 : i32
    return %arg0, %c0_i32, %arg1 : i32, i32, i32
  }
  func.func @transform_1(%arg0: i32, %arg1: i32) -> (i32, i32) {
    %c0_i32 = arith.constant 0 : i32
    %c0_i32_0 = arith.constant 0 : i32
    %c0_i32_1 = arith.constant 0 : i32
    return %c0_i32, %c0_i32_0 : i32, i32
  }
  func.func @transform_2(%arg0: i32, %arg1: i32) -> (i32, i32) {
    %c0_i32 = arith.constant 0 : i32
    %c0_i32_0 = arith.constant 0 : i32
    %c0_i32_1 = arith.constant 0 : i32
    return %c0_i32, %c0_i32_0 : i32, i32
  }
  func.func @transform_3(%arg0: i32, %arg1: i32) -> (i32, i32) {
    %c0_i32 = arith.constant 0 : i32
    %c0_i32_0 = arith.constant 0 : i32
    %c0_i32_1 = arith.constant 0 : i32
    return %c0_i32, %c0_i32_0 : i32, i32
  }
  func.func @transform_4(%arg0: i32, %arg1: i32) -> (i32, i32) {
    %c0_i32 = arith.constant 0 : i32
    %c0_i32_0 = arith.constant 0 : i32
    %c0_i32_1 = arith.constant 0 : i32
    return %c0_i32, %c0_i32_0 : i32, i32
  }
  func.func @transform_5(%arg0: i32, %arg1: i32) -> (i32, i32, i32) {
    %c0_i32 = arith.constant 0 : i32
    %c0_i32_0 = arith.constant 0 : i32
    %c0_i32_1 = arith.constant 0 : i32
    return %arg0, %c0_i32, %c0_i32_0 : i32, i32, i32
  }
}

</mosaic_0001>

<bundles_post_ra>
// kernel: tpu_custom_call.1
= control target key start
LH: loop header
LB: loop body
LE: loop exit
PB: predicated region body
PF: predicated region fallthrough
CT: control target
= control target key end

     0   :  { %10 = vsyncpa [#allocation5], 0  ;;  %s527_s0 = inlined_call_operand.hbm [shape: f32[2,16,256], index: 0, kind: input, shape index: {}]   ;;  %s528_s1 = inlined_call_operand.vmem [shape: f32[16,2], index: 1, kind: input, shape index: {}]   ;;  %s529_s2 = inlined_call_operand.vmem [shape: f32[1,2], index: 2, kind: input, shape index: {}]   ;;  %s530_s3 = inlined_call_operand.vmem [shape: f32[2,16], index: 3, kind: input, shape index: {}]   ;;  %s531_s4 = inlined_call_operand.vmem [shape: f32[1,16], index: 4, kind: input, shape index: {}]   ;;  %s532_s5 = inlined_call_operand.hbm [shape: f32[2,1,16], index: 5, kind: output, shape index: {}]  }
   0x1   :  { %11 = vsyncpa [#allocation6], 0  ;;  %s449_s18 = smov [#allocation4]  }
   0x2   :  { %s17_s19 = sshll.u32 %s449_s18, 4  ;;  %s18_s19 = int_to_ptr.vmem [resolvable:$true] %s17_s19 }
   0x3   :  { %s413_s20 = scalar_lea.vmem %s18_s19, 1024  ;;  %p418_p1 = scmp.lt.s32.totalorder %s18_s19, %s18_s19 }
   0x4   :  { %p414_p0 = scmp.ne.s32.totalorder %s18_s19, %s413_s20  ;;  %p419_p2 = scmp.lt.s32.totalorder %s413_s20, %s413_s20 }
   0x6   :  { %p420_p3 = por %p419_p2, %p418_p1 }
   0x8   :  { %p421_p4 = pnand %p420_p3, %p414_p0 }
   0xa   :  { %424 = shalt.err (!%p421_p4)
}
   0xb   :  { %s450_s21 = smov 256   ;;  %s451_s22 = smov 16  }
   0xc   :  { %23 = dma.hbm_to_vmem [thread:$0]  %s527_s0, 1024, %s18_s19, [#allocation5], %s450_s21, %s450_s21, %s451_s22  }
   0xd   :  { %445 = dma.done.wait [#allocation5], 1024  }
   0xe   :  { %446 = vsyncadd [#allocation5], 4294966272  ;;  %v46_v0 = vld [vmem:[#allocation4 + $0x20] sm:$0xff]  ;;  %v47_v1 = vld [vmem:[#allocation4 + $0x28] sm:$0xff]  ;;  %vm39_vm0 = vcmask 123904   ;;  %v452_v16 = vmov 0.0   ;;  %v67_v20 = vlaneseq }
   0xf   :  { %v42_v2 = vld [vmem:[#allocation4] sm:$0xff]  ;;  %v57_v3 = vadd.f32 %v47_v1, %v46_v0  ;;  %v43_v4 = vld [vmem:[#allocation4 + $0x8] sm:$0xff]  ;;  %v48_v5 = vld [vmem:[#allocation4 + $0x30] sm:$0xff]  ;;  %v102_v15 = vmax.f32 %v46_v0, %v47_v1  ;;  %40 = vst.msk [vmem:[#allocation2] sm:$0x3] %vm39_vm0, %v452_v16  ;;  %380 = vmatprep.subr.mxu0 %v452_v16  ;;  %387 = vmatprep.subr.mxu1 %v452_v16  ;;  %v453_v17 = vmov -inf  }
  0x10   :  { %v49_v6 = vld [vmem:[#allocation4 + $0x38] sm:$0xff]  ;;  %v51_v7 = vadd.f32 %v43_v4, %v42_v2  ;;  %v44_v8 = vld [vmem:[#allocation4 + $0x10] sm:$0xff]  ;;  %v96_v13 = vmax.f32 %v42_v2, %v43_v4  ;;  %41 = vst.msk [vmem:[#allocation3] sm:$0x3] %vm39_vm0, %v453_v17  ;;  %v146_v18 = vld [vmem:[%s528_s1 + $0x8] sm:$0xff]  ;;  %vm454_vm1 = vmmov 0  }
  0x11   :  { %v45_v9 = vld [vmem:[#allocation4 + $0x18] sm:$0xff]  ;;  %58 = vadd.xlane.f32.xlu1 %v57_v3  ;;  %v60_v10 = vadd.f32 %v49_v6, %v48_v5  ;;  %v105_v14 = vmax.f32 %v48_v5, %v49_v6  ;;  %381 = vmatpush3.msra.mxu0 %v146_v18  ;;  %v68_v21 = vand.u32 127, %v67_v20  ;;  %v500_v22 = vshrl.u32 %v67_v20, 7 }
  0x12   :  { %52 = vadd.xlane.f32.xlu0 %v51_v7  ;;  %v54_v11 = vadd.f32 %v45_v9, %v44_v8  ;;  %v99_v12 = vmax.f32 %v44_v8, %v45_v9  ;;  %v145_v19 = vld [vmem:[%s528_s1] sm:$0xff]  ;;  %384 = vmatprep.mubr.msk.f32.mxu0 %vm454_vm1, %v452_v16  ;;  %vm78_vm2 = vcmask 130112   ;;  %vm89_vm3 = vcmask 1041409  }
  0x13   :  { %382 = vmatprep.subr.mxu0 %v452_v16  ;;  %389 = vmatprep.mubr.msk.f32.mxu1 %vm454_vm1, %v452_v16  ;;  %v73_v23 = vadd.s32 4294967288, %v68_v21  ;;  %v71_v25 = vsub.s32 %v68_v21, %v500_v22  ;;  %vm143_vm4 = vcmask 1041408   ;;  %vm154_vm5 = vcmask 130048   ;;  %v229_v57 = vld [vmem:[%s530_s3] sm:$0x3] }
  0x14   :  { %383 = vmatpush3.msra.mxu0 %v145_v19  ;;  %388 = vmatpush3.msk.msra.mxu1 %vm143_vm4, %v229_v57  ;;  %v369_v58 = vld [vmem:[%s529_s2] ss:$0 sm:$0xff]  ;;  %vm237_vm6 = vcmask 15360   ;;  %v455_v8 = vmov 1966171168   ;;  %vm349_vm7 = vcmask 122880  }
  0x15   :  { %61 = vadd.xlane.f32.xlu1 %v60_v10  ;;  %v76_v27 = vsub.s32 %v73_v23, %v500_v22  ;;  %v371_v63 = vld [vmem:[%s531_s4] ss:$0 sm:$0xff]  ;;  %v326_v9 = vunpack.c.l.s4 %v455_v8  ;;  %s456_s2 = smov [#allocation7]  }
  0x16   :  { %55 = vadd.xlane.f32.xlu0 %v54_v11  ;;  %v50_v35 = vld [vmem:[#allocation2] sm:$0x3]  ;;  %s357_s3 = sshll.u32 %s456_s2, 4  ;;  %s358_s3 = int_to_ptr.vmem [resolvable:$true] %s357_s3 }
  0x17   :  { %v95_v47 = vld [vmem:[#allocation3] sm:$0x3]  ;;  %v327_v10 = vunpack.c.0.s8 %v326_v9  ;;  %s425_s4 = scalar_lea.vmem %s358_s3, 32  ;;  %p430_p6 = scmp.lt.s32.totalorder %s358_s3, %s358_s3 }
  0x18   :  { %p426_p5 = scmp.ne.s32.totalorder %s358_s3, %s425_s4  ;;  %p431_p7 = scmp.lt.s32.totalorder %s425_s4, %s425_s4 }
  0x19   :  { %100 = vmax.xlane.f32.xlu1 %v99_v12  ;;  %v330_v11 = vsub.s32 %v327_v10, %v500_v22 }
  0x1a   :  { %97 = vmax.xlane.f32.xlu0 %v96_v13  ;;  %p432_p8 = por %p431_p7, %p430_p6 }
  0x1c   :  { %p433_p9 = pnand %p432_p8, %p426_p5 }
  0x1d   :  { %106 = vmax.xlane.f32.xlu1 %v105_v14 }
  0x1e   :  { %103 = vmax.xlane.f32.xlu0 %v102_v15 }
  0x9a   :  { %v59_v24 = vpop.xlane.xlu1 %58 }
  0x9b   :  { %v53_v26 = vpop.xlane.xlu0 %52  ;;  %v83_v29 = vrot.slane %v59_v24, %v71_v25 }
  0x9c   :  { %v72_v32 = vrot.slane %v53_v26, %v71_v25 }
  0x9e   :  { %v62_v28 = vpop.xlane.xlu1 %61 }
  0x9f   :  { %v87_v30 = vrot.slane %v62_v28, %v76_v27  ;;  %v56_v31 = vpop.xlane.xlu0 %55 }
  0xa0   :  { %v77_v33 = vrot.slane %v56_v31, %v76_v27 }
  0xa1   :  { %v88_v34 = vsel %vm78_vm2, %v87_v30, %v83_v29 }
  0xa2   :  { %v79_v36 = vsel %vm78_vm2, %v77_v33, %v72_v32  ;;  %v101_v37 = vpop.xlane.xlu1 %100 }
  0xa3   :  { %v90_v38 = vsel %vm89_vm3, %v88_v34, %v79_v36  ;;  %v98_v39 = vpop.xlane.xlu0 %97  ;;  %v119_v41 = vrot.slane %v101_v37, %v76_v27 }
  0xa4   :  { %v92_v40 = vadd.f32 %v90_v38, %v50_v35  ;;  %v115_v42 = vrot.slane %v98_v39, %v71_v25 }
  0xa6   :  { %94 = vst.msk [vmem:[#allocation2] sm:$0x3] %vm39_vm0, %v92_v40  ;;  %v107_v43 = vpop.xlane.xlu1 %106  ;;  %v120_v48 = vsel %vm78_vm2, %v119_v41, %v115_v42 }
  0xa7   :  { %v128_v44 = vrot.slane %v107_v43, %v76_v27  ;;  %v104_v45 = vpop.xlane.xlu0 %103 }
  0xa8   :  { %v124_v46 = vrot.slane %v104_v45, %v71_v25 }
  0xaa   :  { %v129_v49 = vsel %vm78_vm2, %v128_v44, %v124_v46 }
  0xab   :  { %v130_v50 = vsel %vm89_vm3, %v129_v49, %v120_v48 }
  0xac   :  { %v132_v51 = vmax.f32 %v95_v47, %v130_v50 }
  0xad   :  { %v137_v52 = vld [vmem:[#allocation2] sm:$0x3] }
  0xae   :  { %133 = vst.msk [vmem:[#allocation3] sm:$0x3] %vm39_vm0, %v132_v51  ;;  %v138_v54 = vmul.f32 0.00390625, %v137_v52 }
  0xb5   :  { %v139_v53 = vld [vmem:[#allocation3] sm:$0x3] }
  0xb6   :  { %v141_v55 = vrot.slane %v139_v53, 6 }
  0xb8   :  { %v144_v56 = vsel %vm143_vm4, %v138_v54, %v141_v55 }
  0xb9   :  { %385 = vmatmul.mubr.msk.f32.vlgmr.msra.gmra.mxu0 %vm154_vm5, %v144_v56 }
 0x179   :  { %v224_v59 = vpop.f32.mrf.mxu0 }
 0x17a   :  { %v225_v60 = vadd.f32 %v369_v58, %v224_v59 }
 0x17b   :  { %v386_v61 = vpop.f32.mrf.mxu0 }
 0x17c   :  { %v228_v62 = vmax.f32 %v225_v60, 0.0 }
 0x17e   :  { %390 = vmatmul.mubr.msk.f32.vlgmr.msra.gmra.mxu1 %vm237_vm6, %v228_v62 }
 0x23e   :  { %v310_v0 = vpop.f32.mrf.mxu1 }
 0x23f   :  { %v311_v1 = vadd.f32 %v371_v63, %v310_v0 }
 0x240   :  { %v391_v2 = vpop.f32.mrf.mxu1 }
 0x241   :  { %v315_v3 = vrot.slane %v311_v1, 2 }
 0x243   :  { %v317_v4 = vadd.f32 %v315_v3, %v311_v1 }
 0x245   :  { %v374_v5 = vmul.f32 -1.442695, %v317_v4 }
 0x247   :  { %401 = vpow2.f32 %v374_v5 }
 0x254   :  { %v402_v6 = vpop.eup %401 }
 0x255   :  { %v321_v7 = vadd.f32 1.0, %v402_v6 }
 0x257   :  { %403 = vrcp.f32 %v321_v7 }
 0x264   :  { %v404_v12 = vpop.eup %403 }
 0x265   :  { %v331_v13 = vrot.slane %v404_v12, %v330_v11 }
 0x267   :  { %v332_v14 = vcombine.high %v331_v13, %v331_v13  ;;  %v339_v15 = vrot.slane %v331_v13, %v330_v11 }
 0x269   :  { %v346_v16 = vrot.slane %v332_v14, %v330_v11  ;;  %350 = vst.msk [vmem:[#allocation7] sm:$0x1] %vm349_vm7, %v339_v15 }
 0x26b   :  { %351 = vst.msk [vmem:[#allocation7 + $0x1] sm:$0x1] %vm349_vm7, %v346_v16 }
 0x26c   :  { %436 = shalt.err (!%p433_p9)
}
 0x26d   :  { %s457_s8 = smov 1  }
 0x26e   :  { %363 = dma.vmem_to_hbm [thread:$0]  %s358_s3, 32, %s532_s5, [#allocation6], %s451_s22, %s451_s22, %s457_s8  }
 0x26f   :  { %447 = dma.done.wait [#allocation6], 32  }
 0x270   :  { %448 = vsyncadd [#allocation6], 4294967264 }
 0x271   :  { %367 = vsyncpa [#allocation5], 1 }
 0x272   :  { %368 = vsyncpa [#allocation6], 1 }

</bundles_post_ra>
